<compile_context>
chip_gen: v6e
topology: v6e:2x2x1
jax: 0.10.0
libtpu: 0.0.40
codegen_flags: <defaults>
</compile_context>

<pallas_src>
import jax
import jax.numpy as jnp
from jax import lax
from jax.experimental import pallas as pl
from jax.experimental.pallas import tpu as pltpu


def _round_up(x, m):
    return (x + m - 1) // m * m


def _conv_bn_relu_kernel(x_ref, w_ref, shift_ref, o_ref):
    # x_ref:     (TM, K*K*Cin)   im2col activation tile (rows = output pixels)
    # w_ref:     (K*K*Cin, TCout) conv weights with BN scale folded in
    # shift_ref: (1, TCout)       beta - mean * scale   (f32)
    # o_ref:     (TM, TCout)
    y = jnp.dot(x_ref[...], w_ref[...], preferred_element_type=jnp.float32)
    y = y + shift_ref[...]                                 # folded-BN shift (f32)
    o_ref[...] = jnp.maximum(y, 0.0).astype(o_ref.dtype)   # ReLU


def conv_bn_relu(x_nchw, weight_oihw, gamma, beta, running_mean, running_var,
                 *, dilation=1, eps=1e-5, compute_dtype=jnp.float32,
                 block_m=256, block_cout=128):
    N, Cin, H, W = x_nchw.shape
    Cout, Cin_w, K, K2 = weight_oihw.shape
    assert Cin == Cin_w and K == K2

    pad = (K + 2 * (dilation - 1) - 1) // 2          # PyTorch padding of this module
    Hout = H + 2 * pad - dilation * (K - 1)
    Wout = W + 2 * pad - dilation * (K - 1)
    KKC = K * K * Cin

    # ---------------- wrapper-side glue (plain JAX, fuses in XLA) --------------------
    # Fold BatchNorm (eval / running stats): scale goes into the weights, shift stays.
    scale = (gamma / jnp.sqrt(running_var + eps)).astype(jnp.float32)      # (Cout,)
    shift = (beta - running_mean * scale).astype(jnp.float32)              # (Cout,)

    # NCHW -> NHWC, spatial zero-pad, im2col along the channel (lane) axis.
    x_nhwc = jnp.transpose(x_nchw, (0, 2, 3, 1))
    x_sp = jnp.pad(x_nhwc, ((0, 0), (pad, pad), (pad, pad), (0, 0)))
    cols = [x_sp[:, kh * dilation:kh * dilation + Hout,
                 kw * dilation:kw * dilation + Wout, :]
            for kh in range(K) for kw in range(K)]
    x_cols = jnp.concatenate(cols, axis=-1)                # (N, Hout, Wout, KKC)

    # Flatten every output pixel into one GEMM row axis; pad to a sublane-aligned tile.
    M = N * Hout * Wout
    x_mat = x_cols.reshape(M, KKC).astype(compute_dtype)
    TM = min(block_m, _round_up(M, 8))
    M_pad = _round_up(M, TM)
    if M_pad != M:
        x_mat = jnp.pad(x_mat, ((0, M_pad - M), (0, 0)))

    # Pad Cout to a lane-dense multiple of 128.
    Cout_pad = _round_up(Cout, 128)
    TCout = min(block_cout, Cout_pad)
    assert Cout_pad % TCout == 0 and TCout % 128 == 0

    # Weights: OIHW -> HWIO, fold BN scale, flatten the K*K taps, pad Cout.
    w_hwio = jnp.transpose(weight_oihw, (2, 3, 1, 0)).astype(jnp.float32)  # (K,K,Cin,Cout)
    w_mat = (w_hwio * scale[None, None, None, :]).reshape(KKC, Cout)
    w_mat = jnp.pad(w_mat, ((0, 0), (0, Cout_pad - Cout))).astype(compute_dtype)
    shift2 = jnp.pad(shift, (0, Cout_pad - Cout)).reshape(1, Cout_pad)     # f32

    # ---------------- Pallas call -----------------------------------------------------
    grid = (Cout_pad // TCout, M_pad // TM)   # Cout outermost -> weight tile stays resident

    itemsize = jnp.dtype(compute_dtype).itemsize
    vmem_bytes = (2 * TM * KKC * itemsize          # double-buffered input tiles
                  + 2 * TM * TCout * 4             # double-buffered output tiles
                  + 2 * (KKC * TCout * itemsize + TCout * 4)   # weights + shift
                  + (2 << 20))                     # margin
    assert vmem_bytes <= (64 << 20), "tile too large for v7x VMEM; shrink block_m/block_cout"
    vmem_limit = min(max(vmem_bytes, 4 << 20), 64 << 20)

    cost = pl.CostEstimate(
        flops=2 * M_pad * KKC * Cout_pad,
        transcendentals=0,
        bytes_accessed=(M_pad * KKC * itemsize + KKC * Cout_pad * itemsize
                        + M_pad * Cout_pad * 4))

    out_mat = pl.pallas_call(
        _conv_bn_relu_kernel,
        out_shape=jax.ShapeDtypeStruct((M_pad, Cout_pad), jnp.float32),
        grid_spec=pltpu.PrefetchScalarGridSpec(
            num_scalar_prefetch=0,
            grid=grid,
            in_specs=[
                pl.BlockSpec((TM, KKC), lambda c, m: (m, 0)),
                pl.BlockSpec((KKC, TCout), lambda c, m: (0, c)),
                pl.BlockSpec((1, TCout), lambda c, m: (0, c)),
            ],
            out_specs=pl.BlockSpec((TM, TCout), lambda c, m: (m, c)),
        ),
        compiler_params=pltpu.CompilerParams(
            dimension_semantics=("parallel", "parallel"),
            vmem_limit_bytes=vmem_limit),
        cost_estimate=cost,
    )(x_mat, w_mat, shift2)

    out = out_mat[:M, :Cout].reshape(N, Hout, Wout, Cout)
    return jnp.transpose(out, (0, 3, 1, 2))      # back to NCHW


def reference(x_nchw, weight_oihw, gamma, beta, running_mean, running_var,
              *, dilation=1, eps=1e-5):
    K = weight_oihw.shape[2]
    pad = (K + 2 * (dilation - 1) - 1) // 2
    y = lax.conv_general_dilated(
        x_nchw.astype(jnp.float32), weight_oihw.astype(jnp.float32),
        window_strides=(1, 1), padding=[(pad, pad), (pad, pad)],
        rhs_dilation=(dilation, dilation),
        dimension_numbers=("NCHW", "OIHW", "NCHW"))
    scale = gamma / jnp.sqrt(running_var + eps)
    shift = beta - running_mean * scale
    y = y * scale[None, :, None, None] + shift[None, :, None, None]
    return jnp.maximum(y, 0.0)


if __name__ == "__main__":
    key = jax.random.PRNGKey(0)
    k_x, k_w, k_m, k_v, k_g, k_b = jax.random.split(key, 6)

    N, Cin, H, W = 2, 4, 16, 16
    Cout, K, dilation = 8, 3, 1

    x = jax.random.normal(k_x, (N, Cin, H, W), jnp.float32)
    weight = jax.random.normal(k_w, (Cout, Cin, K, K), jnp.float32) * 0.1
    gamma = 1.0 + 0.1 * jax.random.normal(k_g, (Cout,), jnp.float32)
    beta = 0.1 * jax.random.normal(k_b, (Cout,), jnp.float32)
    running_mean = 0.1 * jax.random.normal(k_m, (Cout,), jnp.float32)
    running_var = 1.0 + jnp.abs(jax.random.normal(k_v, (Cout,), jnp.float32)) * 0.1

    ref = reference(x, weight, gamma, beta, running_mean, running_var,
                    dilation=dilation)

    # f32 path: tight tolerance against the XLA reference.
    out_f32 = conv_bn_relu(x, weight, gamma, beta, running_mean, running_var,
                           dilation=dilation, compute_dtype=jnp.float32)
    out_f32 = jax.block_until_ready(out_f32)
    assert out_f32.shape == (N, Cout, H, W)
    assert jnp.allclose(out_f32, ref, atol=1e-4, rtol=1e-4), "f32 mismatch vs reference"

    # bf16 MXU fast path (v6e/v7x), f32 accumulation: looser tolerance.
    out_bf16 = conv_bn_relu(x, weight, gamma, beta, running_mean, running_var,
                            dilation=dilation, compute_dtype=jnp.bfloat16)
    out_bf16 = jax.block_until_ready(out_bf16)
    assert out_bf16.shape == (N, Cout, H, W)
    assert jnp.allclose(out_bf16, ref, atol=3e-2, rtol=3e-2), "bf16 mismatch vs reference"

    print("KERNEL_OK")
</pallas_src>

<mosaic_0001>
module attributes {stable_mosaic.version = 11 : i64} {
  func.func @_conv_bn_relu_kernel(%arg0: i32, %arg1: i32, %arg2: memref<256x36xf32, #tpu.memory_space<vmem>>, %arg3: memref<36x128xf32, #tpu.memory_space<vmem>>, %arg4: memref<1x128xf32, #tpu.memory_space<vmem>>, %arg5: memref<256x128xf32, #tpu.memory_space<vmem>>) attributes {dimension_semantics = [#tpu.dimension_semantics<parallel>, #tpu.dimension_semantics<parallel>], iteration_bounds = array<i64: 1, 2>, scalar_prefetch = 0 : i64, scratch_operands = 0 : i64, tpu.core_type = #tpu.core_type<tc>, window_params = [{transform_indices = @transform_0, window_bounds = array<i64: 256, 36>}, {transform_indices = @transform_1, window_bounds = array<i64: 36, 128>}, {transform_indices = @transform_2, window_bounds = array<i64: 1, 128>}, {transform_indices = @transform_3, window_bounds = array<i64: 256, 128>}]} {
    %c0 = arith.constant 0 : index
    %c0_0 = arith.constant 0 : index
    %0 = vector.load %arg2[%c0, %c0_0] : memref<256x36xf32, #tpu.memory_space<vmem>>, vector<256x36xf32>
    %c0_1 = arith.constant 0 : index
    %c0_2 = arith.constant 0 : index
    %1 = vector.load %arg3[%c0_1, %c0_2] : memref<36x128xf32, #tpu.memory_space<vmem>>, vector<36x128xf32>
    %cst = arith.constant dense<0.000000e+00> : vector<256x128xf32>
    %2 = tpu.matmul %0, %1, %cst {dimension_numbers = #tpu.dot_dimension_numbers<[1], [0], [0], [1], [0, 0, 1, 1], [], []>} : vector<256x36xf32>, vector<36x128xf32>, vector<256x128xf32> -> vector<256x128xf32>
    %c0_3 = arith.constant 0 : index
    %c0_4 = arith.constant 0 : index
    %3 = vector.load %arg4[%c0_3, %c0_4] : memref<1x128xf32, #tpu.memory_space<vmem>>, vector<1x128xf32>
    %4 = vector.broadcast %3 : vector<1x128xf32> to vector<256x128xf32>
    %5 = arith.addf %2, %4 : vector<256x128xf32>
    %cst_5 = arith.constant 0.000000e+00 : f32
    %6 = vector.broadcast %cst_5 : f32 to vector<256x128xf32>
    %7 = arith.maximumf %5, %6 : vector<256x128xf32>
    %c0_6 = arith.constant 0 : index
    %c0_7 = arith.constant 0 : index
    %8 = vector.load %arg5[%c0_6, %c0_7] : memref<256x128xf32, #tpu.memory_space<vmem>>, vector<256x128xf32>
    tpu.vector_store %arg5[%c0_6, %c0_7], %7 {strides = array<i32>} : memref<256x128xf32, #tpu.memory_space<vmem>>, vector<256x128xf32>,
    return
  }
  func.func @transform_0(%arg0: i32, %arg1: i32) -> (i32, i32) {
    %c0_i32 = arith.constant 0 : i32
    %c0_i32_0 = arith.constant 0 : i32
    return %arg1, %c0_i32 : i32, i32
  }
  func.func @transform_1(%arg0: i32, %arg1: i32) -> (i32, i32) {
    %c0_i32 = arith.constant 0 : i32
    %c0_i32_0 = arith.constant 0 : i32
    return %c0_i32, %arg0 : i32, i32
  }
  func.func @transform_2(%arg0: i32, %arg1: i32) -> (i32, i32) {
    %c0_i32 = arith.constant 0 : i32
    %c0_i32_0 = arith.constant 0 : i32
    return %c0_i32, %arg0 : i32, i32
  }
  func.func @transform_3(%arg0: i32, %arg1: i32) -> (i32, i32) {
    %c0_i32 = arith.constant 0 : i32
    return %arg1, %arg0 : i32, i32
  }
}

</mosaic_0001>

<bundles_post_ra>
// kernel: tpu_custom_call.1
= control target key start
LH: loop header
LB: loop body
LE: loop exit
PB: predicated region body
PF: predicated region fallthrough
CT: control target
= control target key end

     0   :  { %8 = vsyncpa [#allocation3], 0  ;;  %s1348_s0 = inlined_call_operand.vmem [shape: f32[512,36], index: 0, kind: input, shape index: {}]   ;;  %s1349_s1 = inlined_call_operand.vmem [shape: f32[36,128], index: 1, kind: input, shape index: {}]   ;;  %s1350_s2 = inlined_call_operand.vmem [shape: f32[1,128], index: 2, kind: input, shape index: {}]   ;;  %s1351_s3 = inlined_call_operand.hbm [shape: f32[512,128], index: 3, kind: output, shape index: {}]  }
   0x1   :  { %10 = vsyncpa [#allocation3 + $0x1], 0  ;;  %s1078_s12 = smov 0   ;;  %s1080_s13 = smov 0  }
   0x2   :  { %s1082_s14 = smov 0   ;;  %s1084_s15 = smov 0  }
   0x3   :  { %s1086_s16 = smov 0   ;;  %s1088_s17 = smov 0  }
   0x4 LB: > { %s765_s18 = sadd.s32 4294967295, %s1053_s17   ;;  %s766_s19 = sadd.s32 4294967294, %s1053_s17   ;;  %s1053_s17 = sphi %s1088_s17, %s16_s17   ;;  %s1049_s16 = sphi %s1086_s16, %s1358_s16   ;;  %s1045_s15 = sphi %s1084_s15, %s1357_s15   ;;  %s1041_s14 = sphi %s1082_s14, %s1356_s14   ;;  %s1037_s13 = sphi %s1080_s13, %s1355_s13   ;;  %s1033_s12 = sphi %s1078_s12, %s1354_s12  }
   0x5   : > { %s25_s20 = sadd.s32 1, %s1049_s16  ;;  %s115_s21 = sadd.s32 1, %s1041_s14 }
   0x6   : > { %p26_p0 = scmp.ge.s32.totalorder %s25_s20, 2  ;;  %p125_p1 = scmp.ne.s32.totalorder %s1041_s14, %s1037_s13 }
   0x7   : > { %p126_p2 = scmp.eq.s32.totalorder %s765_s18, 1  ;;  %p131_p3 = scmp.ne.s32.totalorder %s1037_s13, %s1033_s12 }
   0x8   : > { %s1360_s20 = smov (%p26_p0, %s25_s20), 0  ;;  %p132_p5 = scmp.eq.s32.totalorder %s766_s19, 1 }
   0x9   : > { %p1118_p4 = por %p126_p2, %p125_p1  ;;  %s110_s23 = ssub.s32 %s1049_s16, %s1360_s20 }
   0xa   : > { %p771_p6 = scmp.ge.s32.totalorder %s1053_s17, 1  ;;  %p113_p7 = scmp.eq.s32.totalorder %s110_s23, 0 }
   0xb   : > { %p1125_p8 = por %p132_p5, %p131_p3  ;;  %p172_p9 = scmp.lt.s32.totalorder %s1053_s17, 3 }
   0xc   : > { %s1131_s25 = scalar_select %p113_p7, %s1041_s14, %s115_s21  }
   0xd   : > { %p173_p10 = pnand %p771_p6, %p172_p9 }
   0xe   : > { %s773_s30 = sshll.u32 (!%p173_p10), %s1045_s15, 5  ;;  %s200_s21 = sand.u32 (!%p173_p10), 1, %s1037_s13  }
   0xf   : > { %176 = sbr.rel (%p173_p10) target bundleno = 273 (0x111), region = 32  ;;  %p204_p11 = scmp.lt.s32.totalorder (!%p173_p10), %s773_s30, 63 }
  0x10   : > { %s772_s27 = sshll.u32 (!%p173_p10), %s200_s21, 8  ;;  %s814_s29 = sshll.u32 (!%p173_p10), %s1045_s15, 12 }
  0x11   : > { %s1230_s28 = scalar_lea.vmem (!%p173_p10), [#allocation2], %s772_s27  ;;  %s1293_s6 = scalar_lea.hbm (!%p173_p10), %s1351_s3, %s814_s29 }
  0x12   : > { %s1303_s15 = scalar_lea.sflag (!%p173_p10), [#allocation3], %s200_s21 }
  0x14   : > { %v253_v0 = vld [vmem:[%s1349_s1 + $0x20] sm:$0xf]  ;;  %vm358_vm0 = vcmask 1043456   ;;  %v252_v1 = vld [vmem:[%s1349_s1 + $0x18] sm:$0xff]  ;;  %v251_v2 = vld [vmem:[%s1349_s1 + $0x10] sm:$0xff]  ;;  %s1362_s30 = smov (!%p204_p11, %s773_s30), 63 }
  0x15   : > { %852 = vmatprep.subr.msk.mxu0 %vm358_vm0, %v253_v0  ;;  %910 = vmatprep.subr.msk.mxu1 %vm358_vm0, %v253_v0  ;;  %v250_v3 = vld [vmem:[%s1349_s1 + $0x8] sm:$0xff]  ;;  %s774_s8 = sshll.u32 %s1362_s30, 3  ;;  %v249_v4 = vld [vmem:[%s1349_s1] sm:$0xff]  ;;  %vm261_vm1 = vcmask 293888   ;;  %s666_s30 = sshll.u32 %s1230_s28, 4  ;;  %s1295_s30 = int_to_ptr.vmem [resolvable:$true] %s666_s30 }
  0x16   : > { %853 = vmatpush3.msk.msra.mxu0 %vm358_vm0, %v253_v0  ;;  %915 = vmatpush3.msk.msra.mxu1 %vm358_vm0, %v253_v0  ;;  %s1152_s19 = scalar_lea.vmem %s1348_s0, %s774_s8  ;;  %v1222_v37 = vld [vmem:[%s1350_s2] ss:$0 sm:$0xff]  ;;  %s977_s7 = scalar_lea.vmem %s1295_s30, 4096 }
  0x17   : > { %854 = vmatprep.subr.mxu0 %v252_v1  ;;  %911 = vmatprep.subr.mxu1 %v252_v1  ;;  %v217_v5 = vld [vmem:[%s1152_s19] sm:$0xff]  ;;  %v218_v7 = vld [vmem:[%s1152_s19 + $0x8] sm:$0xff]  ;;  %v219_v9 = vld [vmem:[%s1152_s19 + $0x10] sm:$0xff]  ;;  %p978_p12 = scmp.ne.s32.totalorder %s1295_s30, %s977_s7  ;;  %s1055_s8 = smov [#allocation2]  }
  0x18   : > { %855 = vmatpush3.msra.mxu0 %v252_v1  ;;  %916 = vmatpush3.msra.mxu1 %v252_v1  ;;  %v233_v6 = vld [vmem:[%s1152_s19 + $0x80] sm:$0xff]  ;;  %v234_v8 = vld [vmem:[%s1152_s19 + $0x88] sm:$0xff]  ;;  %v235_v10 = vld [vmem:[%s1152_s19 + $0x90] sm:$0xff]  ;;  %s981_s9 = sshll.u32 %s1055_s8, 4  ;;  %s982_s9 = int_to_ptr.vmem [resolvable:$false] %s981_s9 }
  0x19   : > { %856 = vmatprep.subr.mxu0 %v251_v2  ;;  %912 = vmatprep.subr.mxu1 %v251_v2  ;;  %v220_v11 = vld [vmem:[%s1152_s19 + $0x18] sm:$0xff]  ;;  %v221_v13 = vld [vmem:[%s1152_s19 + $0x20] sm:$0xff]  ;;  %v222_v15 = vld [vmem:[%s1152_s19 + $0x28] sm:$0xff]  ;;  %p979_p13 = pnand %p978_p12, %p1118_p4  ;;  %s983_s10 = scalar_lea.vmem %s982_s9, 8192 }
  0x1a   : > { %857 = vmatpush3.msra.mxu0 %v251_v2  ;;  %917 = vmatpush3.msra.mxu1 %v251_v2  ;;  %v236_v12 = vld [vmem:[%s1152_s19 + $0x98] sm:$0xff]  ;;  %v237_v14 = vld [vmem:[%s1152_s19 + $0xa0] sm:$0xff]  ;;  %v238_v16 = vld [vmem:[%s1152_s19 + $0xa8] sm:$0xff]  ;;  %p984_p1 = scmp.lt.s32.totalorder %s1295_s30, %s982_s9  ;;  %p985_p2 = scmp.lt.s32.totalorder %s983_s10, %s977_s7 }
  0x1b   : > { %858 = vmatprep.subr.mxu0 %v250_v3  ;;  %913 = vmatprep.subr.mxu1 %v250_v3  ;;  %v223_v17 = vld [vmem:[%s1152_s19 + $0x30] sm:$0xff]  ;;  %v224_v19 = vld [vmem:[%s1152_s19 + $0x38] sm:$0xff]  ;;  %v225_v21 = vld [vmem:[%s1152_s19 + $0x40] sm:$0xff]  ;;  %p980_p0 = pneg %p979_p13 }
  0x1c   : > { %859 = vmatpush3.msra.mxu0 %v250_v3  ;;  %918 = vmatpush3.msra.mxu1 %v250_v3  ;;  %v239_v18 = vld [vmem:[%s1152_s19 + $0xb0] sm:$0xff]  ;;  %v240_v20 = vld [vmem:[%s1152_s19 + $0xb8] sm:$0xff]  ;;  %v241_v22 = vld [vmem:[%s1152_s19 + $0xc0] sm:$0xff]  ;;  %p986_p3 = por %p985_p2, %p984_p1 }
  0x1d   : > { %860 = vmatprep.subr.mxu0 %v249_v4  ;;  %914 = vmatprep.subr.mxu1 %v249_v4  ;;  %v226_v23 = vld [vmem:[%s1152_s19 + $0x48] sm:$0xff]  ;;  %v227_v25 = vld [vmem:[%s1152_s19 + $0x50] sm:$0xff]  ;;  %v228_v27 = vld [vmem:[%s1152_s19 + $0x58] sm:$0xff] }
  0x1e   : > { %861 = vmatpush3.msra.mxu0 %v249_v4  ;;  %919 = vmatpush3.msra.mxu1 %v249_v4  ;;  %v242_v24 = vld [vmem:[%s1152_s19 + $0xc8] sm:$0xff]  ;;  %v243_v26 = vld [vmem:[%s1152_s19 + $0xd0] sm:$0xff]  ;;  %v244_v28 = vld [vmem:[%s1152_s19 + $0xd8] sm:$0xff]  ;;  %p987_p5 = pnand %p986_p3, %p980_p0 }
  0x1f   : > { %862 = vmatprep.mubr.msk.f32.mxu0 %vm261_vm1, %v217_v5  ;;  %886 = vmatprep.mubr.msk.f32.mxu1 %vm261_vm1, %v233_v6  ;;  %v229_v29 = vld [vmem:[%s1152_s19 + $0x60] sm:$0xff]  ;;  %v230_v31 = vld [vmem:[%s1152_s19 + $0x68] sm:$0xff]  ;;  %v231_v33 = vld [vmem:[%s1152_s19 + $0x70] sm:$0xff] }
  0x20   : > { %863 = vmatmul.mubr.msk.f32.vlgmr.msra.gmra.mxu0 %vm261_vm1, %v218_v7  ;;  %887 = vmatmul.mubr.msk.f32.vlgmr.msra.gmra.mxu1 %vm261_vm1, %v234_v8  ;;  %v245_v30 = vld [vmem:[%s1152_s19 + $0xe0] sm:$0xff]  ;;  %v246_v32 = vld [vmem:[%s1152_s19 + $0xe8] sm:$0xff]  ;;  %v247_v34 = vld [vmem:[%s1152_s19 + $0xf0] sm:$0xff] }
  0x21   : > { %865 = vmatprep.mubr.msk.f32.mxu0 %vm261_vm1, %v219_v9  ;;  %889 = vmatprep.mubr.msk.f32.mxu1 %vm261_vm1, %v235_v10  ;;  %v232_v35 = vld [vmem:[%s1152_s19 + $0x78] sm:$0xff] }
  0x22   : > { %v248_v36 = vld [vmem:[%s1152_s19 + $0xf8] sm:$0xff] }
  0x24   : > { %866 = vmatmul.mubr.msk.f32.gmra.mxu0 %vm261_vm1, %v220_v11  ;;  %890 = vmatmul.mubr.msk.f32.gmra.mxu1 %vm261_vm1, %v236_v12 }
  0x25   : > { %868 = vmatprep.mubr.msk.f32.mxu0 %vm261_vm1, %v221_v13  ;;  %892 = vmatprep.mubr.msk.f32.mxu1 %vm261_vm1, %v237_v14 }
  0x28   : > { %869 = vmatmul.mubr.msk.f32.gmra.mxu0 %vm261_vm1, %v222_v15  ;;  %893 = vmatmul.mubr.msk.f32.gmra.mxu1 %vm261_vm1, %v238_v16 }
  0x29   : > { %871 = vmatprep.mubr.msk.f32.mxu0 %vm261_vm1, %v223_v17  ;;  %895 = vmatprep.mubr.msk.f32.mxu1 %vm261_vm1, %v239_v18 }
  0x2c   : > { %872 = vmatmul.mubr.msk.f32.gmra.mxu0 %vm261_vm1, %v224_v19  ;;  %896 = vmatmul.mubr.msk.f32.gmra.mxu1 %vm261_vm1, %v240_v20 }
  0x2d   : > { %874 = vmatprep.mubr.msk.f32.mxu0 %vm261_vm1, %v225_v21  ;;  %898 = vmatprep.mubr.msk.f32.mxu1 %vm261_vm1, %v241_v22 }
  0x30   : > { %875 = vmatmul.mubr.msk.f32.gmra.mxu0 %vm261_vm1, %v226_v23  ;;  %899 = vmatmul.mubr.msk.f32.gmra.mxu1 %vm261_vm1, %v242_v24 }
  0x31   : > { %877 = vmatprep.mubr.msk.f32.mxu0 %vm261_vm1, %v227_v25  ;;  %901 = vmatprep.mubr.msk.f32.mxu1 %vm261_vm1, %v243_v26 }
  0x34   : > { %878 = vmatmul.mubr.msk.f32.gmra.mxu0 %vm261_vm1, %v228_v27  ;;  %902 = vmatmul.mubr.msk.f32.gmra.mxu1 %vm261_vm1, %v244_v28 }
  0x35   : > { %880 = vmatprep.mubr.msk.f32.mxu0 %vm261_vm1, %v229_v29  ;;  %904 = vmatprep.mubr.msk.f32.mxu1 %vm261_vm1, %v245_v30 }
  0x38   : > { %881 = vmatmul.mubr.msk.f32.gmra.mxu0 %vm261_vm1, %v230_v31  ;;  %905 = vmatmul.mubr.msk.f32.gmra.mxu1 %vm261_vm1, %v246_v32 }
  0x39   : > { %883 = vmatprep.mubr.msk.f32.mxu0 %vm261_vm1, %v231_v33  ;;  %907 = vmatprep.mubr.msk.f32.mxu1 %vm261_vm1, %v247_v34 }
  0x3c   : > { %884 = vmatmul.mubr.msk.f32.gmra.mxu0 %vm261_vm1, %v232_v35  ;;  %908 = vmatmul.mubr.msk.f32.gmra.mxu1 %vm261_vm1, %v248_v36 }
  0xe0   : > { %v864_v38 = vpop.f32.mrf.mxu0  ;;  %v888_v39 = vpop.f32.mrf.mxu1 }
  0xe1   : > { %v434_v40 = vadd.f32 %v864_v38, %v1222_v37  ;;  %v514_v41 = vadd.f32 %v888_v39, %v1222_v37 }
  0xe2   : > { %v428_v42 = vpop.f32.mrf.mxu0  ;;  %v508_v43 = vpop.f32.mrf.mxu1 }
  0xe3   : > { %v588_v44 = vmax.f32 %v434_v40, 0.0  ;;  %v604_v45 = vmax.f32 %v514_v41, 0.0  ;;  %v429_v46 = vadd.f32 %v1222_v37, %v428_v42  ;;  %v509_v47 = vadd.f32 %v1222_v37, %v508_v43 }
  0xe4   : > { %v867_v48 = vpop.f32.mrf.mxu0  ;;  %v891_v49 = vpop.f32.mrf.mxu1 }
  0xe5   : > { %620 = vst [vmem:[%s1230_s28 + $0x8] sm:$0xff] %v588_v44  ;;  %636 = vst [vmem:[%s1230_s28 + $0x88] sm:$0xff] %v604_v45  ;;  %v587_v50 = vmax.f32 %v429_v46, 0.0  ;;  %v603_v51 = vmax.f32 %v509_v47, 0.0  ;;  %v444_v52 = vadd.f32 %v867_v48, %v1222_v37  ;;  %v524_v53 = vadd.f32 %v891_v49, %v1222_v37 }
  0xe6   : > { %v438_v54 = vpop.f32.mrf.mxu0  ;;  %v518_v55 = vpop.f32.mrf.mxu1 }
  0xe7   : > { %619 = vst [vmem:[%s1230_s28] sm:$0xff] %v587_v50  ;;  %635 = vst [vmem:[%s1230_s28 + $0x80] sm:$0xff] %v603_v51  ;;  %v590_v56 = vmax.f32 %v444_v52, 0.0  ;;  %v606_v57 = vmax.f32 %v524_v53, 0.0  ;;  %v439_v58 = vadd.f32 %v1222_v37, %v438_v54  ;;  %v519_v59 = vadd.f32 %v1222_v37, %v518_v55 }
  0xe8   : > { %v870_v60 = vpop.f32.mrf.mxu0  ;;  %v894_v61 = vpop.f32.mrf.mxu1 }
  0xe9   : > { %622 = vst [vmem:[%s1230_s28 + $0x18] sm:$0xff] %v590_v56  ;;  %638 = vst [vmem:[%s1230_s28 + $0x98] sm:$0xff] %v606_v57  ;;  %v589_v62 = vmax.f32 %v439_v58, 0.0  ;;  %v605_v63 = vmax.f32 %v519_v59, 0.0  ;;  %v454_v0 = vadd.f32 %v870_v60, %v1222_v37  ;;  %v534_v1 = vadd.f32 %v894_v61, %v1222_v37 }
  0xea   : > { %v448_v2 = vpop.f32.mrf.mxu0  ;;  %v528_v3 = vpop.f32.mrf.mxu1 }
  0xeb   : > { %621 = vst [vmem:[%s1230_s28 + $0x10] sm:$0xff] %v589_v62  ;;  %637 = vst [vmem:[%s1230_s28 + $0x90] sm:$0xff] %v605_v63  ;;  %v592_v4 = vmax.f32 %v454_v0, 0.0  ;;  %v608_v5 = vmax.f32 %v534_v1, 0.0  ;;  %v449_v6 = vadd.f32 %v1222_v37, %v448_v2  ;;  %v529_v7 = vadd.f32 %v1222_v37, %v528_v3 }
  0xec   : > { %v873_v8 = vpop.f32.mrf.mxu0  ;;  %v897_v9 = vpop.f32.mrf.mxu1 }
  0xed   : > { %624 = vst [vmem:[%s1230_s28 + $0x28] sm:$0xff] %v592_v4  ;;  %640 = vst [vmem:[%s1230_s28 + $0xa8] sm:$0xff] %v608_v5  ;;  %v591_v10 = vmax.f32 %v449_v6, 0.0  ;;  %v607_v11 = vmax.f32 %v529_v7, 0.0  ;;  %v464_v12 = vadd.f32 %v873_v8, %v1222_v37  ;;  %v544_v13 = vadd.f32 %v897_v9, %v1222_v37 }
  0xee   : > { %v458_v14 = vpop.f32.mrf.mxu0  ;;  %v538_v15 = vpop.f32.mrf.mxu1 }
  0xef   : > { %623 = vst [vmem:[%s1230_s28 + $0x20] sm:$0xff] %v591_v10  ;;  %639 = vst [vmem:[%s1230_s28 + $0xa0] sm:$0xff] %v607_v11  ;;  %v594_v16 = vmax.f32 %v464_v12, 0.0  ;;  %v610_v17 = vmax.f32 %v544_v13, 0.0  ;;  %v459_v18 = vadd.f32 %v1222_v37, %v458_v14  ;;  %v539_v19 = vadd.f32 %v1222_v37, %v538_v15 }
  0xf0   : > { %v876_v20 = vpop.f32.mrf.mxu0  ;;  %v900_v21 = vpop.f32.mrf.mxu1 }
  0xf1   : > { %626 = vst [vmem:[%s1230_s28 + $0x38] sm:$0xff] %v594_v16  ;;  %642 = vst [vmem:[%s1230_s28 + $0xb8] sm:$0xff] %v610_v17  ;;  %v593_v22 = vmax.f32 %v459_v18, 0.0  ;;  %v609_v23 = vmax.f32 %v539_v19, 0.0  ;;  %v474_v24 = vadd.f32 %v876_v20, %v1222_v37  ;;  %v554_v25 = vadd.f32 %v900_v21, %v1222_v37 }
  0xf2   : > { %v468_v26 = vpop.f32.mrf.mxu0  ;;  %v548_v27 = vpop.f32.mrf.mxu1 }
  0xf3   : > { %625 = vst [vmem:[%s1230_s28 + $0x30] sm:$0xff] %v593_v22  ;;  %641 = vst [vmem:[%s1230_s28 + $0xb0] sm:$0xff] %v609_v23  ;;  %v596_v28 = vmax.f32 %v474_v24, 0.0  ;;  %v612_v29 = vmax.f32 %v554_v25, 0.0  ;;  %v469_v30 = vadd.f32 %v1222_v37, %v468_v26  ;;  %v549_v31 = vadd.f32 %v1222_v37, %v548_v27 }
  0xf4   : > { %v879_v32 = vpop.f32.mrf.mxu0  ;;  %v903_v33 = vpop.f32.mrf.mxu1 }
  0xf5   : > { %628 = vst [vmem:[%s1230_s28 + $0x48] sm:$0xff] %v596_v28  ;;  %644 = vst [vmem:[%s1230_s28 + $0xc8] sm:$0xff] %v612_v29  ;;  %v595_v34 = vmax.f32 %v469_v30, 0.0  ;;  %v611_v35 = vmax.f32 %v549_v31, 0.0  ;;  %v484_v36 = vadd.f32 %v879_v32, %v1222_v37  ;;  %v564_v38 = vadd.f32 %v903_v33, %v1222_v37 }
  0xf6   : > { %v478_v39 = vpop.f32.mrf.mxu0  ;;  %v558_v40 = vpop.f32.mrf.mxu1 }
  0xf7   : > { %627 = vst [vmem:[%s1230_s28 + $0x40] sm:$0xff] %v595_v34  ;;  %643 = vst [vmem:[%s1230_s28 + $0xc0] sm:$0xff] %v611_v35  ;;  %v598_v41 = vmax.f32 %v484_v36, 0.0  ;;  %v614_v42 = vmax.f32 %v564_v38, 0.0  ;;  %v479_v43 = vadd.f32 %v1222_v37, %v478_v39  ;;  %v559_v44 = vadd.f32 %v1222_v37, %v558_v40 }
  0xf8   : > { %v882_v45 = vpop.f32.mrf.mxu0  ;;  %v906_v46 = vpop.f32.mrf.mxu1 }
  0xf9   : > { %630 = vst [vmem:[%s1230_s28 + $0x58] sm:$0xff] %v598_v41  ;;  %646 = vst [vmem:[%s1230_s28 + $0xd8] sm:$0xff] %v614_v42  ;;  %v597_v47 = vmax.f32 %v479_v43, 0.0  ;;  %v613_v48 = vmax.f32 %v559_v44, 0.0  ;;  %v494_v49 = vadd.f32 %v882_v45, %v1222_v37  ;;  %v574_v50 = vadd.f32 %v906_v46, %v1222_v37 }
  0xfa   : > { %v488_v51 = vpop.f32.mrf.mxu0  ;;  %v568_v52 = vpop.f32.mrf.mxu1 }
  0xfb   : > { %629 = vst [vmem:[%s1230_s28 + $0x50] sm:$0xff] %v597_v47  ;;  %645 = vst [vmem:[%s1230_s28 + $0xd0] sm:$0xff] %v613_v48  ;;  %v600_v53 = vmax.f32 %v494_v49, 0.0  ;;  %v616_v54 = vmax.f32 %v574_v50, 0.0  ;;  %v489_v55 = vadd.f32 %v1222_v37, %v488_v51  ;;  %v569_v56 = vadd.f32 %v1222_v37, %v568_v52 }
  0xfc   : > { %v885_v57 = vpop.f32.mrf.mxu0  ;;  %v909_v58 = vpop.f32.mrf.mxu1 }
  0xfd   : > { %632 = vst [vmem:[%s1230_s28 + $0x68] sm:$0xff] %v600_v53  ;;  %648 = vst [vmem:[%s1230_s28 + $0xe8] sm:$0xff] %v616_v54  ;;  %v599_v59 = vmax.f32 %v489_v55, 0.0  ;;  %v615_v60 = vmax.f32 %v569_v56, 0.0  ;;  %v504_v61 = vadd.f32 %v885_v57, %v1222_v37  ;;  %v584_v62 = vadd.f32 %v909_v58, %v1222_v37 }
  0xfe   : > { %v498_v63 = vpop.f32.mrf.mxu0  ;;  %v578_v0 = vpop.f32.mrf.mxu1 }
  0xff   : > { %631 = vst [vmem:[%s1230_s28 + $0x60] sm:$0xff] %v599_v59  ;;  %647 = vst [vmem:[%s1230_s28 + $0xe0] sm:$0xff] %v615_v60  ;;  %v602_v1 = vmax.f32 %v504_v61, 0.0  ;;  %v618_v2 = vmax.f32 %v584_v62, 0.0  ;;  %v499_v3 = vadd.f32 %v1222_v37, %v498_v63  ;;  %v579_v4 = vadd.f32 %v1222_v37, %v578_v0 }
 0x101   : > { %634 = vst [vmem:[%s1230_s28 + $0x78] sm:$0xff] %v602_v1  ;;  %650 = vst [vmem:[%s1230_s28 + $0xf8] sm:$0xff] %v618_v2  ;;  %v601_v5 = vmax.f32 %v499_v3, 0.0  ;;  %v617_v6 = vmax.f32 %v579_v4, 0.0 }
 0x103   : > { %633 = vst [vmem:[%s1230_s28 + $0x70] sm:$0xff] %v601_v5  ;;  %649 = vst [vmem:[%s1230_s28 + $0xf0] sm:$0xff] %v617_v6 }
 0x104   : > { %990 = shalt.err (!%p987_p5)
}
 0x105   : > { %s991_s11 = scalar_lea.hbm %s1293_s6, 4096  ;;  %s995_s21 = scalar_lea.hbm %s1351_s3, 8192 }
 0x106   : > { %p992_p6 = scmp.ne.s32.totalorder %s1293_s6, %s991_s11  ;;  %p996_p10 = scmp.lt.s32.totalorder %s1293_s6, %s1351_s3 }
 0x107   : > { %p997_p11 = scmp.lt.s32.totalorder %s995_s21, %s991_s11 }
 0x108   : > { %p993_p7 = pnand %p992_p6, %p1118_p4 }
 0x109   : > { %p998_p12 = por %p997_p11, %p996_p10 }
 0x10a   : > { %p994_p9 = pneg %p993_p7 }
 0x10c   : > { %p999_p13 = pnand %p998_p12, %p994_p9 }
 0x10e   : > { %1002 = shalt.err (!%p999_p13)
}
 0x10f   : > { %s1056_s27 = smov 128   ;;  %s1057_s28 = smov 8  }
 0x110   : > { %920 = dma.vmem_to_hbm [thread:$0]  (%p1118_p4), %s1295_s30, 4096, %s1293_s6, %s1303_s15, %s1056_s27, %s1056_s27, %s1057_s28  }
 0x111 PF: > { %p926_p0 = scmp.ge.s32.totalorder %s1053_s17, 2  ;;  %s681_s29 = sand.u32 1, %s1033_s12  }
 0x112   : > { %s682_s4 = scalar_lea.sflag [#allocation3], %s681_s29 }
 0x113   : > { %p923_p1 = pnand %p926_p0, %p1125_p8 }
 0x115   : > { %p924_p2 = pneg %p923_p1 }
 0x117   : > { %1028 = dma.done.wait (%p924_p2), %s682_s4, 4096  }
 0x118   : > { %1030 = vsyncadd (%p924_p2), %s682_s4, 4294963200  ;;  %s16_s17 = sadd.s32 1, %s1053_s17   ;;  %s1354_s12 = smov %s1037_s13 }
 0x119   : > { %p13_p3 = scmp.ge.s32.totalorder %s16_s17, 4   ;;  %s1355_s13 = smov %s1041_s14 }
 0x11a   : > { %s1356_s14 = smov %s1131_s25  ;;  %s1357_s15 = smov %s1049_s16 }
 0x11b   : > { %s1358_s16 = smov %s1360_s20  ;;  %15 = sbr.rel (!%p13_p3) target bundleno = 4 (0x4), region = 73 }
 0x120   :  { %687 = vsyncpa [#allocation3], 1 }
 0x121   :  { %689 = vsyncpa [#allocation3 + $0x1], 1 }

</bundles_post_ra>
